<compile_context>
chip_gen: v7x
topology: tpu7x:2x2x1
jax: 0.10.0
libtpu: 0.0.40
codegen_flags: <defaults>
</compile_context>

<pallas_src>
import functools

import jax
import jax.numpy as jnp
from jax import lax
from jax.experimental import pallas as pl
from jax.experimental.pallas import tpu as pltpu


def _choose_block_q(n_pixel: int) -> int:
    """Largest 128-aligned query tile that divides n_pixel, else full length."""
    for t in (512, 256, 128):
        if n_pixel % t == 0:
            return t
    return n_pixel


# ----------------------------------------------------------------------------
# Fused kernel: q/k/v projection + multi-head attention + merge + out-proj.
# Each grid step handles one (batch, query-tile) pair and writes the final
# (block_q, query_dim) slab of the output.
# ----------------------------------------------------------------------------
def _cross_attention_kernel(pix_ref, pat_ref, wq_ref, wk_ref, wv_ref,
                            wo_ref, bo_ref, o_ref, *,
                            heads, dim_head, scale, mxu_dtype):
    x = pix_ref[0]                                   # (block_q, Dq)   f32
    c = pat_ref[0].astype(mxu_dtype)                 # (n_patch, Dc)

    # Project all heads in one lane-dense matmul each (MXU N = inner_dim).
    q = jnp.dot(x.astype(mxu_dtype), wq_ref[...].astype(mxu_dtype),
                preferred_element_type=jnp.float32)  # (block_q, inner)
    q = q * scale                                    # scale q, not sim
    k = jnp.dot(c, wk_ref[...].astype(mxu_dtype),
                preferred_element_type=jnp.float32)  # (n_patch, inner)
    v = jnp.dot(c, wv_ref[...].astype(mxu_dtype),
                preferred_element_type=jnp.float32)  # (n_patch, inner)

    wo = wo_ref[...]                                 # (inner, Dq)
    acc = jnp.zeros(o_ref.shape[1:], jnp.float32)    # (block_q, Dq)  f32 acc

    for h in range(heads):                           # static unroll; slices of
        lo = h * dim_head                            # VMEM values are free
        hi = lo + dim_head
        qh = q[:, lo:hi].astype(mxu_dtype)           # (block_q, dh)
        kh = k[:, lo:hi].astype(mxu_dtype)           # (n_patch, dh)
        vh = v[:, lo:hi].astype(mxu_dtype)           # (n_patch, dh)

        # q @ k^T without materializing a transpose: contract shared last dim.
        sim = lax.dot_general(qh, kh,
                              dimension_numbers=(((1,), (1,)), ((), ())),
                              preferred_element_type=jnp.float32)  # (bq, n_patch)

        # Numerically-stable softmax along the key axis, kept in f32.
        sim = sim - jnp.max(sim, axis=-1, keepdims=True)
        p = jnp.exp(sim)
        attn = p * pl.reciprocal(jnp.sum(p, axis=-1, keepdims=True), approx=True)

        oh = jnp.dot(attn.astype(mxu_dtype), vh,
                     preferred_element_type=jnp.float32)           # (bq, dh)

        # Fused head-merge + output projection: project this head's slice of
        # W_out and accumulate in f32; output store stays lane-dense (last
        # dim = query_dim) — no (.., dh)-wide masked stores anywhere.
        acc = acc + jnp.dot(oh.astype(mxu_dtype),
                            wo[lo:hi, :].astype(mxu_dtype),
                            preferred_element_type=jnp.float32)

    o_ref[0] = (acc + bo_ref[...]).astype(o_ref.dtype)


def cross_attention_forward(pixel_embed, patch_embed, params, *, heads, dim_head,
                            mxu_dtype=jnp.bfloat16):
    """pixel_embed: (B, n_pixel, query_dim), patch_embed: (B, n_patch, context_dim)."""
    B, n_pixel, Dq = pixel_embed.shape
    _, n_patch, Dc = patch_embed.shape
    inner = heads * dim_head
    scale = dim_head ** (-0.5)

    block_q = _choose_block_q(n_pixel)
    grid = (B, n_pixel // block_q)

    kernel = functools.partial(_cross_attention_kernel, heads=heads,
                               dim_head=dim_head, scale=scale,
                               mxu_dtype=mxu_dtype)

    return pl.pallas_call(
        kernel,
        out_shape=jax.ShapeDtypeStruct((B, n_pixel, Dq), pixel_embed.dtype),
        grid_spec=pltpu.PrefetchScalarGridSpec(
            num_scalar_prefetch=0,
            grid=grid,
            in_specs=[
                pl.BlockSpec((1, block_q, Dq), lambda b, qt: (b, qt, 0)),
                pl.BlockSpec((1, n_patch, Dc), lambda b, qt: (b, 0, 0)),
                pl.BlockSpec((Dq, inner), lambda b, qt: (0, 0)),
                pl.BlockSpec((Dc, inner), lambda b, qt: (0, 0)),
                pl.BlockSpec((Dc, inner), lambda b, qt: (0, 0)),
                pl.BlockSpec((inner, Dq), lambda b, qt: (0, 0)),
                pl.BlockSpec((1, Dq), lambda b, qt: (0, 0)),
            ],
            out_specs=pl.BlockSpec((1, block_q, Dq), lambda b, qt: (b, qt, 0)),
        ),
        compiler_params=pltpu.CompilerParams(
            dimension_semantics=("parallel", "parallel")),
    )(pixel_embed, patch_embed, params["wq"], params["wk"], params["wv"],
      params["w_out"], params["b_out"])


# ----------------------------------------------------------------------------
# Pure-JAX reference (for correctness check only).
# ----------------------------------------------------------------------------
def cross_attention_reference(pixel_embed, patch_embed, params, *, heads, dim_head):
    scale = dim_head ** (-0.5)
    q = pixel_embed @ params["wq"]
    k = patch_embed @ params["wk"]
    v = patch_embed @ params["wv"]

    def split(t):
        b, n, _ = t.shape
        return t.reshape(b, n, heads, dim_head).transpose(0, 2, 1, 3)

    q, k, v = split(q), split(k), split(v)
    sim = jnp.einsum("bhid,bhjd->bhij", q, k) * scale
    attn = jax.nn.softmax(sim, axis=-1)
    out = jnp.einsum("bhij,bhjd->bhid", attn, v)
    b, h, n, d = out.shape
    out = out.transpose(0, 2, 1, 3).reshape(b, n, h * d)
    return out @ params["w_out"] + params["b_out"]


if __name__ == "__main__":
    # Small shapes consistent with the module.
    B = 2
    n_pixel = 16       # query sequence length
    n_patch = 8        # context sequence length
    query_dim = 32
    context_dim = 32   # default(context_dim, query_dim)
    heads = 2
    dim_head = 16
    inner_dim = heads * dim_head

    key = jax.random.PRNGKey(0)
    k0, k1, k2, k3, k4, k5, k6 = jax.random.split(key, 7)

    pixel_embed = jax.random.normal(k0, (B, n_pixel, query_dim), jnp.float32)
    patch_embed = jax.random.normal(k1, (B, n_patch, context_dim), jnp.float32)

    params = {
        "wq": 0.05 * jax.random.normal(k2, (query_dim, inner_dim), jnp.float32),
        "wk": 0.05 * jax.random.normal(k3, (context_dim, inner_dim), jnp.float32),
        "wv": 0.05 * jax.random.normal(k4, (context_dim, inner_dim), jnp.float32),
        "w_out": 0.05 * jax.random.normal(k5, (inner_dim, query_dim), jnp.float32),
        "b_out": 0.05 * jax.random.normal(k6, (1, query_dim), jnp.float32),
    }

    ref = cross_attention_reference(pixel_embed, patch_embed, params,
                                    heads=heads, dim_head=dim_head)

    # f32 MXU path: tight check against the pure-JAX reference.
    out_f32 = cross_attention_forward(pixel_embed, patch_embed, params,
                                      heads=heads, dim_head=dim_head,
                                      mxu_dtype=jnp.float32)
    out_f32 = jax.block_until_ready(out_f32)
    assert out_f32.shape == (B, n_pixel, query_dim)
    assert jnp.allclose(out_f32, ref, atol=1e-3, rtol=1e-3), "f32 mismatch vs reference"

    # bf16 MXU-operand path (default; fast path on v5e/v6e/v7x): looser tolerance.
    out_bf16 = cross_attention_forward(pixel_embed, patch_embed, params,
                                       heads=heads, dim_head=dim_head,
                                       mxu_dtype=jnp.bfloat16)
    out_bf16 = jax.block_until_ready(out_bf16)
    assert out_bf16.shape == (B, n_pixel, query_dim)
    assert jnp.allclose(out_bf16, ref, atol=2e-2, rtol=2e-2), "bf16 mismatch vs reference"

    print("KERNEL_OK")
</pallas_src>

<mosaic_0001>
module attributes {stable_mosaic.version = 11 : i64} {
  func.func @_cross_attention_kernel(%arg0: i32, %arg1: i32, %arg2: memref<1x16x32xf32, #tpu.memory_space<vmem>>, %arg3: memref<1x8x32xf32, #tpu.memory_space<vmem>>, %arg4: memref<32x32xf32, #tpu.memory_space<vmem>>, %arg5: memref<32x32xf32, #tpu.memory_space<vmem>>, %arg6: memref<32x32xf32, #tpu.memory_space<vmem>>, %arg7: memref<32x32xf32, #tpu.memory_space<vmem>>, %arg8: memref<1x32xf32, #tpu.memory_space<vmem>>, %arg9: memref<1x16x32xf32, #tpu.memory_space<vmem>>) attributes {dimension_semantics = [#tpu.dimension_semantics<parallel>, #tpu.dimension_semantics<parallel>], iteration_bounds = array<i64: 2, 1>, scalar_prefetch = 0 : i64, scratch_operands = 0 : i64, tpu.core_type = #tpu.core_type<tc>, window_params = [{transform_indices = @transform_0, window_bounds = array<i64: 1, 16, 32>}, {transform_indices = @transform_1, window_bounds = array<i64: 1, 8, 32>}, {pipeline_mode = #tpu.pipeline_mode<synchronous>, transform_indices = @transform_2, window_bounds = array<i64: 32, 32>}, {pipeline_mode = #tpu.pipeline_mode<synchronous>, transform_indices = @transform_3, window_bounds = array<i64: 32, 32>}, {pipeline_mode = #tpu.pipeline_mode<synchronous>, transform_indices = @transform_4, window_bounds = array<i64: 32, 32>}, {pipeline_mode = #tpu.pipeline_mode<synchronous>, transform_indices = @transform_5, window_bounds = array<i64: 32, 32>}, {pipeline_mode = #tpu.pipeline_mode<synchronous>, transform_indices = @transform_6, window_bounds = array<i64: 1, 32>}, {transform_indices = @transform_7, window_bounds = array<i64: 1, 16, 32>}]} {
    %c0 = arith.constant 0 : index
    %c0_0 = arith.constant 0 : index
    %c0_1 = arith.constant 0 : index
    %0 = vector.load %arg2[%c0, %c0_0, %c0_1] : memref<1x16x32xf32, #tpu.memory_space<vmem>>, vector<1x16x32xf32>
    %1 = vector.shape_cast %0 : vector<1x16x32xf32> to vector<16x32xf32>
    %c0_2 = arith.constant 0 : index
    %c0_3 = arith.constant 0 : index
    %c0_4 = arith.constant 0 : index
    %2 = vector.load %arg3[%c0_2, %c0_3, %c0_4] : memref<1x8x32xf32, #tpu.memory_space<vmem>>, vector<1x8x32xf32>
    %3 = vector.shape_cast %2 : vector<1x8x32xf32> to vector<8x32xf32>
    %c0_5 = arith.constant 0 : index
    %c0_6 = arith.constant 0 : index
    %4 = vector.load %arg4[%c0_5, %c0_6] : memref<32x32xf32, #tpu.memory_space<vmem>>, vector<32x32xf32>
    %cst = arith.constant dense<0.000000e+00> : vector<16x32xf32>
    %5 = tpu.matmul %1, %4, %cst {dimension_numbers = #tpu.dot_dimension_numbers<[1], [0], [0], [1], [0, 0, 1, 1], [], []>} : vector<16x32xf32>, vector<32x32xf32>, vector<16x32xf32> -> vector<16x32xf32>
    %cst_7 = arith.constant 2.500000e-01 : f32
    %6 = vector.broadcast %cst_7 : f32 to vector<16x32xf32>
    %7 = arith.mulf %5, %6 : vector<16x32xf32>
    %c0_8 = arith.constant 0 : index
    %c0_9 = arith.constant 0 : index
    %8 = vector.load %arg5[%c0_8, %c0_9] : memref<32x32xf32, #tpu.memory_space<vmem>>, vector<32x32xf32>
    %cst_10 = arith.constant dense<0.000000e+00> : vector<8x32xf32>
    %9 = tpu.matmul %3, %8, %cst_10 {dimension_numbers = #tpu.dot_dimension_numbers<[1], [0], [0], [1], [0, 0, 1, 1], [], []>} : vector<8x32xf32>, vector<32x32xf32>, vector<8x32xf32> -> vector<8x32xf32>
    %c0_11 = arith.constant 0 : index
    %c0_12 = arith.constant 0 : index
    %10 = vector.load %arg6[%c0_11, %c0_12] : memref<32x32xf32, #tpu.memory_space<vmem>>, vector<32x32xf32>
    %cst_13 = arith.constant dense<0.000000e+00> : vector<8x32xf32>
    %11 = tpu.matmul %3, %10, %cst_13 {dimension_numbers = #tpu.dot_dimension_numbers<[1], [0], [0], [1], [0, 0, 1, 1], [], []>} : vector<8x32xf32>, vector<32x32xf32>, vector<8x32xf32> -> vector<8x32xf32>
    %c0_14 = arith.constant 0 : index
    %c0_15 = arith.constant 0 : index
    %12 = vector.load %arg7[%c0_14, %c0_15] : memref<32x32xf32, #tpu.memory_space<vmem>>, vector<32x32xf32>
    %cst_16 = arith.constant 0.000000e+00 : f32
    %13 = vector.broadcast %cst_16 : f32 to vector<16x32xf32>
    %14 = vector.extract_strided_slice %7 {offsets = [0, 0], sizes = [16, 16], strides = [1, 1]} : vector<16x32xf32> to vector<16x16xf32>
    %15 = vector.extract_strided_slice %9 {offsets = [0, 0], sizes = [8, 16], strides = [1, 1]} : vector<8x32xf32> to vector<8x16xf32>
    %16 = vector.extract_strided_slice %11 {offsets = [0, 0], sizes = [8, 16], strides = [1, 1]} : vector<8x32xf32> to vector<8x16xf32>
    %cst_17 = arith.constant dense<0.000000e+00> : vector<16x8xf32>
    %17 = tpu.matmul %14, %15, %cst_17 {dimension_numbers = #tpu.dot_dimension_numbers<[1], [1], [0], [0], [0, 0, 1, 0], [], []>} : vector<16x16xf32>, vector<8x16xf32>, vector<16x8xf32> -> vector<16x8xf32>
    %cst_18 = arith.constant dense<0xFF800000> : vector<16xf32>
    %18 = vector.multi_reduction <maximumf>, %17, %cst_18 [1] : vector<16x8xf32> to vector<16xf32>
    %19 = vector.shape_cast %18 : vector<16xf32> to vector<16x1xf32>
    %20 = vector.broadcast %19 : vector<16x1xf32> to vector<16x8xf32>
    %21 = arith.subf %17, %20 : vector<16x8xf32>
    %22 = math.exp %21 : vector<16x8xf32>
    %cst_19 = arith.constant dense<0.000000e+00> : vector<16xf32>
    %23 = vector.multi_reduction <add>, %22, %cst_19 [1] : vector<16x8xf32> to vector<16xf32>
    %24 = vector.shape_cast %23 : vector<16xf32> to vector<16x1xf32>
    %25 = tpu.reciprocal %24 {approx = true} : vector<16x1xf32> -> vector<16x1xf32>
    %26 = vector.broadcast %25 : vector<16x1xf32> to vector<16x8xf32>
    %27 = arith.mulf %22, %26 : vector<16x8xf32>
    %cst_20 = arith.constant dense<0.000000e+00> : vector<16x16xf32>
    %28 = tpu.matmul %27, %16, %cst_20 {dimension_numbers = #tpu.dot_dimension_numbers<[1], [0], [0], [1], [0, 0, 1, 1], [], []>} : vector<16x8xf32>, vector<8x16xf32>, vector<16x16xf32> -> vector<16x16xf32>
    %29 = vector.extract_strided_slice %12 {offsets = [0, 0], sizes = [16, 32], strides = [1, 1]} : vector<32x32xf32> to vector<16x32xf32>
    %cst_21 = arith.constant dense<0.000000e+00> : vector<16x32xf32>
    %30 = tpu.matmul %28, %29, %cst_21 {dimension_numbers = #tpu.dot_dimension_numbers<[1], [0], [0], [1], [0, 0, 1, 1], [], []>} : vector<16x16xf32>, vector<16x32xf32>, vector<16x32xf32> -> vector<16x32xf32>
    %31 = arith.addf %13, %30 : vector<16x32xf32>
    %32 = vector.extract_strided_slice %7 {offsets = [0, 16], sizes = [16, 16], strides = [1, 1]} : vector<16x32xf32> to vector<16x16xf32>
    %33 = vector.extract_strided_slice %9 {offsets = [0, 16], sizes = [8, 16], strides = [1, 1]} : vector<8x32xf32> to vector<8x16xf32>
    %34 = vector.extract_strided_slice %11 {offsets = [0, 16], sizes = [8, 16], strides = [1, 1]} : vector<8x32xf32> to vector<8x16xf32>
    %cst_22 = arith.constant dense<0.000000e+00> : vector<16x8xf32>
    %35 = tpu.matmul %32, %33, %cst_22 {dimension_numbers = #tpu.dot_dimension_numbers<[1], [1], [0], [0], [0, 0, 1, 0], [], []>} : vector<16x16xf32>, vector<8x16xf32>, vector<16x8xf32> -> vector<16x8xf32>
    %cst_23 = arith.constant dense<0xFF800000> : vector<16xf32>
    %36 = vector.multi_reduction <maximumf>, %35, %cst_23 [1] : vector<16x8xf32> to vector<16xf32>
    %37 = vector.shape_cast %36 : vector<16xf32> to vector<16x1xf32>
    %38 = vector.broadcast %37 : vector<16x1xf32> to vector<16x8xf32>
    %39 = arith.subf %35, %38 : vector<16x8xf32>
    %40 = math.exp %39 : vector<16x8xf32>
    %cst_24 = arith.constant dense<0.000000e+00> : vector<16xf32>
    %41 = vector.multi_reduction <add>, %40, %cst_24 [1] : vector<16x8xf32> to vector<16xf32>
    %42 = vector.shape_cast %41 : vector<16xf32> to vector<16x1xf32>
    %43 = tpu.reciprocal %42 {approx = true} : vector<16x1xf32> -> vector<16x1xf32>
    %44 = vector.broadcast %43 : vector<16x1xf32> to vector<16x8xf32>
    %45 = arith.mulf %40, %44 : vector<16x8xf32>
    %cst_25 = arith.constant dense<0.000000e+00> : vector<16x16xf32>
    %46 = tpu.matmul %45, %34, %cst_25 {dimension_numbers = #tpu.dot_dimension_numbers<[1], [0], [0], [1], [0, 0, 1, 1], [], []>} : vector<16x8xf32>, vector<8x16xf32>, vector<16x16xf32> -> vector<16x16xf32>
    %47 = vector.extract_strided_slice %12 {offsets = [16, 0], sizes = [16, 32], strides = [1, 1]} : vector<32x32xf32> to vector<16x32xf32>
    %cst_26 = arith.constant dense<0.000000e+00> : vector<16x32xf32>
    %48 = tpu.matmul %46, %47, %cst_26 {dimension_numbers = #tpu.dot_dimension_numbers<[1], [0], [0], [1], [0, 0, 1, 1], [], []>} : vector<16x16xf32>, vector<16x32xf32>, vector<16x32xf32> -> vector<16x32xf32>
    %49 = arith.addf %31, %48 : vector<16x32xf32>
    %c0_27 = arith.constant 0 : index
    %c0_28 = arith.constant 0 : index
    %50 = vector.load %arg8[%c0_27, %c0_28] : memref<1x32xf32, #tpu.memory_space<vmem>>, vector<1x32xf32>
    %51 = vector.broadcast %50 : vector<1x32xf32> to vector<16x32xf32>
    %52 = arith.addf %49, %51 : vector<16x32xf32>
    %c0_29 = arith.constant 0 : index
    %c0_30 = arith.constant 0 : index
    %c0_31 = arith.constant 0 : index
    %53 = vector.load %arg9[%c0_29, %c0_30, %c0_31] : memref<1x16x32xf32, #tpu.memory_space<vmem>>, vector<1x16x32xf32>
    %54 = vector.shape_cast %53 : vector<1x16x32xf32> to vector<16x32xf32>
    %55 = vector.shape_cast %52 : vector<16x32xf32> to vector<1x16x32xf32>
    tpu.vector_store %arg9[%c0_29, %c0_30, %c0_31], %55 {strides = array<i32>} : memref<1x16x32xf32, #tpu.memory_space<vmem>>, vector<1x16x32xf32>,
    return
  }
  func.func @transform_0(%arg0: i32, %arg1: i32) -> (i32, i32, i32) {
    %c0_i32 = arith.constant 0 : i32
    %c0_i32_0 = arith.constant 0 : i32
    return %arg0, %arg1, %c0_i32 : i32, i32, i32
  }
  func.func @transform_1(%arg0: i32, %arg1: i32) -> (i32, i32, i32) {
    %c0_i32 = arith.constant 0 : i32
    %c0_i32_0 = arith.constant 0 : i32
    %c0_i32_1 = arith.constant 0 : i32
    return %arg0, %c0_i32, %c0_i32_0 : i32, i32, i32
  }
  func.func @transform_2(%arg0: i32, %arg1: i32) -> (i32, i32) {
    %c0_i32 = arith.constant 0 : i32
    %c0_i32_0 = arith.constant 0 : i32
    %c0_i32_1 = arith.constant 0 : i32
    return %c0_i32, %c0_i32_0 : i32, i32
  }
  func.func @transform_3(%arg0: i32, %arg1: i32) -> (i32, i32) {
    %c0_i32 = arith.constant 0 : i32
    %c0_i32_0 = arith.constant 0 : i32
    %c0_i32_1 = arith.constant 0 : i32
    return %c0_i32, %c0_i32_0 : i32, i32
  }
  func.func @transform_4(%arg0: i32, %arg1: i32) -> (i32, i32) {
    %c0_i32 = arith.constant 0 : i32
    %c0_i32_0 = arith.constant 0 : i32
    %c0_i32_1 = arith.constant 0 : i32
    return %c0_i32, %c0_i32_0 : i32, i32
  }
  func.func @transform_5(%arg0: i32, %arg1: i32) -> (i32, i32) {
    %c0_i32 = arith.constant 0 : i32
    %c0_i32_0 = arith.constant 0 : i32
    %c0_i32_1 = arith.constant 0 : i32
    return %c0_i32, %c0_i32_0 : i32, i32
  }
  func.func @transform_6(%arg0: i32, %arg1: i32) -> (i32, i32) {
    %c0_i32 = arith.constant 0 : i32
    %c0_i32_0 = arith.constant 0 : i32
    %c0_i32_1 = arith.constant 0 : i32
    return %c0_i32, %c0_i32_0 : i32, i32
  }
  func.func @transform_7(%arg0: i32, %arg1: i32) -> (i32, i32, i32) {
    %c0_i32 = arith.constant 0 : i32
    %c0_i32_0 = arith.constant 0 : i32
    return %arg0, %arg1, %c0_i32 : i32, i32, i32
  }
}

</mosaic_0001>

<bundles_post_ra>
// kernel: tpu_custom_call.1
= control target key start
LH: loop header
LB: loop body
LE: loop exit
PB: predicated region body
PF: predicated region fallthrough
CT: control target
= control target key end

     0   :  { %s2418_s0 = inlined_call_operand.hbm [shape: f32[2,16,32], index: 0, kind: input, shape index: {}]   ;;  %s2419_s1 = inlined_call_operand.hbm [shape: f32[2,8,32], index: 1, kind: input, shape index: {}]   ;;  %s2420_s2 = inlined_call_operand.hbm [shape: f32[32,32], index: 2, kind: input, shape index: {}]   ;;  %s2421_s3 = inlined_call_operand.hbm [shape: f32[32,32], index: 3, kind: input, shape index: {}]   ;;  %s2422_s4 = inlined_call_operand.hbm [shape: f32[32,32], index: 4, kind: input, shape index: {}]   ;;  %s2423_s5 = inlined_call_operand.hbm [shape: f32[32,32], index: 5, kind: input, shape index: {}]   ;;  %s2424_s6 = inlined_call_operand.vmem [shape: f32[1,32], index: 6, kind: input, shape index: {}]   ;;  %s2425_s7 = inlined_call_operand.hbm [shape: f32[2,16,32], index: 7, kind: output, shape index: {}]  }
   0x1   :  { %2434 = sst [smem:[#allocation22_spill]] %s2418_s0 }
   0x2   :  { %2435 = sst [smem:[#allocation23_spill]] %s2420_s2 }
   0x3   :  { %2436 = sst [smem:[#allocation24_spill]] %s2421_s3 }
   0x4   :  { %2437 = sst [smem:[#allocation25_spill]] %s2422_s4 }
   0x5   :  { %2438 = sst [smem:[#allocation26_spill]] %s2425_s7 }
   0x6   :  { %12 = vsyncpa [#allocation3], 0 }
   0x7   :  { %14 = vsyncpa [#allocation3 + $0x1], 0 }
   0x8   :  { %15 = vsyncpa [#allocation6], 0 }
   0x9   :  { %17 = vsyncpa [#allocation6 + $0x1], 0 }
   0xa   :  { %18 = vsyncpa [#allocation9], 0 }
   0xb   :  { %19 = vsyncpa [#allocation12], 0 }
   0xc   :  { %20 = vsyncpa [#allocation4], 0 }
   0xd   :  { %22 = vsyncpa [#allocation4 + $0x1], 0  ;;  %s2017_s24 = smov 0   ;;  %s2019_s25 = smov 0  }
   0xe   :  { %s2021_s26 = smov 0   ;;  %s2023_s27 = smov 0  }
   0xf   :  { %s2025_s28 = smov 0   ;;  %s2027_s29 = smov 0  }
  0x10 LB: > { %2439 = sst [smem:[#allocation20_spill]] %s1940_s24  ;;  %s2048_s30 = sadd.s32 4294967295, %s1960_s29   ;;  %s1960_s29 = sphi %s2027_s29, %s28_s29   ;;  %s1956_s28 = sphi %s2025_s28, %s2473_s28   ;;  %s1952_s27 = sphi %s2023_s27, %s2472_s27   ;;  %s1948_s26 = sphi %s2021_s26, %s2471_s26   ;;  %s1944_s25 = sphi %s2019_s25, %s2470_s25   ;;  %s1940_s24 = sphi %s2017_s24, %s2469_s24  }
  0x11   : > { %s1379_s8 = sadd.s32 4294967294, %s1960_s29   ;;  %p62_p0 = scmp.ne.s32.totalorder %s1944_s25, %s1940_s24 }
  0x12   : > { %p2426_p1 = scmp.eq.s32.totalorder %s2048_s30, 0  ;;  %p225_p3 = scmp.eq.s32.totalorder %s1379_s8, 1 }
  0x13   : > { %p1380_p5 = scmp.ge.s32.totalorder %s1960_s29, 1  ;;  %p232_p7 = scmp.lt.s32.totalorder %s1960_s29, 3 }
  0x14   : > { %p2057_p4 = por %p2426_p1, %p62_p0  ;;  %p2062_p6 = por %p225_p3, %p62_p0 }
  0x15   : > { %p2067_p8 = pnand %p1380_p5, %p232_p7  ;;  %s1962_s12 = smov [#allocation7]  }
  0x16   : > { %s2440_s9 = scalar_select %p2057_p4, 1, 0 }
  0x17   : > { %s2441_s10 = scalar_select %p2062_p6, 1, 0 }
  0x18   : > { %s2443_s11 = scalar_select %p2067_p8, 1, 0 }
  0x19   : > { %2442 = sst [smem:[#allocation21_spill]] %s2441_s10  ;;  %s244_s13 = sshll.u32 %s1962_s12, 4  ;;  %s2071_s13 = int_to_ptr.vmem [resolvable:$true] %s244_s13 }
  0x1a   : > { %p1580_p9 = pneg %p2067_p8  ;;  %s1963_s15 = smov [#allocation8]  }
  0x1b   : > { %s257_s16 = sshll.u32 %s1963_s15, 4  ;;  %s1964_s17 = smov [#allocation10]   ;;  %s2082_s16 = int_to_ptr.vmem [resolvable:$true] %s257_s16 }
  0x1c   : > { %p2078_p11 = pnand %p1580_p9, %p2426_p1  ;;  %s2084_s18 = sshll.u32 %s1964_s17, 4  ;;  %s271_s18 = int_to_ptr.vmem [resolvable:$true] %s2084_s18 }
  0x1d   : > { %s2445_s2 = sld [smem:[#allocation23_spill]] }
  0x1e   : > { %p2094_p13 = pneg %p2078_p11 }
  0x23   : > { %s1690_s21 = scalar_lea.hbm %s2445_s2, 512 }
  0x24   : > { %p1691_p12 = scmp.ne.s32.totalorder %s2445_s2, %s1690_s21  ;;  %p1697_p5 = scmp.lt.u32.totalorder %s1690_s21, %s2445_s2 }
  0x26   : > { %p1693_p0 = pnand %p2094_p13, %p1691_p12 }
  0x28   : > { %p1694_p3 = pneg %p1693_p0 }
  0x2a   : > { %p1699_p7 = pnand %p1697_p5, %p1694_p3 }
  0x2c   : > { %1702 = shalt.err (!%p1699_p7)
}
  0x2d   : > { %s1703_s17 = scalar_lea.vmem %s2071_s13, 512  ;;  %p1711_p2 = scmp.lt.s32.totalorder %s2071_s13, %s2071_s13 }
  0x2e   : > { %p1704_p9 = scmp.ne.s32.totalorder %s2071_s13, %s1703_s17  ;;  %p1712_p6 = scmp.lt.s32.totalorder %s1703_s17, %s1703_s17 }
  0x30   : > { %p1706_p10 = pnand %p1704_p9, %p2094_p13  ;;  %p1713_p12 = por %p1712_p6, %p1711_p2 }
  0x32   : > { %p1707_p1 = pneg %p1706_p10 }
  0x34   : > { %p1714_p0 = pnand %p1713_p12, %p1707_p1 }
  0x36   : > { %1717 = shalt.err (!%p1714_p0)
}
  0x37   : > { %s2432_s19 = smov 128   ;;  %s1966_s20 = smov 8  }
  0x38   : > { %1583 = dma.hbm_to_vmem [thread:$0]  (!%p2078_p11), %s2445_s2, 512, %s2071_s13, [#allocation6], %s2432_s19, %s2432_s19, %s1966_s20  }
  0x39   : > { %s2447_s3 = sld [smem:[#allocation24_spill]] }
  0x3f   : > { %s1718_s15 = scalar_lea.hbm %s2447_s3, 512 }
  0x40   : > { %p1719_p1 = scmp.ne.s32.totalorder %s2447_s3, %s1718_s15  ;;  %p1725_p10 = scmp.lt.u32.totalorder %s1718_s15, %s2447_s3 }
  0x42   : > { %p1721_p2 = pnand %p1719_p1, %p2094_p13 }
  0x44   : > { %p1722_p6 = pneg %p1721_p2 }
  0x46   : > { %p1727_p3 = pnand %p1725_p10, %p1722_p6 }
  0x48   : > { %1730 = shalt.err (!%p1727_p3)
}
  0x49   : > { %s1731_s13 = scalar_lea.vmem %s2082_s16, 512  ;;  %p1739_p12 = scmp.lt.s32.totalorder %s2082_s16, %s2082_s16 }
  0x4a   : > { %p1732_p5 = scmp.ne.s32.totalorder %s2082_s16, %s1731_s13  ;;  %p1740_p0 = scmp.lt.s32.totalorder %s1731_s13, %s1731_s13 }
  0x4c   : > { %p1734_p7 = pnand %p1732_p5, %p2094_p13  ;;  %p1741_p1 = por %p1740_p0, %p1739_p12 }
  0x4e   : > { %p1735_p9 = pneg %p1734_p7 }
  0x50   : > { %p1742_p2 = pnand %p1741_p1, %p1735_p9 }
  0x52   : > { %1745 = shalt.err (!%p1742_p2)
}
  0x53   : > { %1586 = dma.hbm_to_vmem [thread:$0]  (!%p2078_p11), %s2447_s3, 512, %s2082_s16, [#allocation9], %s2432_s19, %s2432_s19, %s1966_s20  }
  0x54   : > { %s2448_s4 = sld [smem:[#allocation25_spill]] }
  0x5a   : > { %s1746_s22 = scalar_lea.hbm %s2448_s4, 512 }
  0x5b   : > { %p1747_p6 = scmp.ne.s32.totalorder %s2448_s4, %s1746_s22  ;;  %p1753_p5 = scmp.lt.u32.totalorder %s1746_s22, %s2448_s4 }
  0x5d   : > { %p1749_p10 = pnand %p1747_p6, %p2094_p13 }
  0x5f   : > { %p1750_p3 = pneg %p1749_p10 }
  0x61   : > { %p1755_p7 = pnand %p1753_p5, %p1750_p3 }
  0x63   : > { %1758 = shalt.err (!%p1755_p7)
}
  0x64   : > { %s1759_s13 = scalar_lea.vmem %s271_s18, 512  ;;  %p1767_p1 = scmp.lt.s32.totalorder %s271_s18, %s271_s18 }
  0x65   : > { %p1760_p9 = scmp.ne.s32.totalorder %s271_s18, %s1759_s13  ;;  %p1768_p2 = scmp.lt.s32.totalorder %s1759_s13, %s1759_s13 }
  0x67   : > { %p1762_p12 = pnand %p1760_p9, %p2094_p13  ;;  %p1769_p4 = por %p1768_p2, %p1767_p1 }
  0x69   : > { %p1763_p0 = pneg %p1762_p12 }
  0x6b   : > { %p1770_p8 = pnand %p1769_p4, %p1763_p0 }
  0x6d   : > { %1773 = shalt.err (!%p1770_p8)
}
  0x6e   : > { %1589 = dma.hbm_to_vmem [thread:$0]  (!%p2078_p11), %s2448_s4, 512, %s271_s18, [#allocation9], %s2432_s19, %s2432_s19, %s1966_s20  }
  0x6f   : > { %s1967_s24 = smov [#allocation11]   ;;  %s1774_s23 = scalar_lea.hbm %s2423_s5, 512 }
  0x70   : > { %s283_s10 = sshll.u32 %s1967_s24, 4  ;;  %p1775_p4 = scmp.ne.s32.totalorder %s2423_s5, %s1774_s23  ;;  %s284_s10 = int_to_ptr.vmem [resolvable:$true] %s283_s10 }
  0x71   : > { %p1781_p10 = scmp.lt.u32.totalorder %s1774_s23, %s2423_s5 }
  0x72   : > { %p1777_p8 = pnand %p1775_p4, %p2094_p13 }
  0x74   : > { %p1778_p6 = pneg %p1777_p8 }
  0x76   : > { %p1783_p3 = pnand %p1781_p10, %p1778_p6 }
  0x78   : > { %1786 = shalt.err (!%p1783_p3)
}
  0x79   : > { %s1787_s18 = scalar_lea.vmem %s284_s10, 512  ;;  %p1795_p12 = scmp.lt.s32.totalorder %s284_s10, %s284_s10 }
  0x7a   : > { %p1788_p5 = scmp.ne.s32.totalorder %s284_s10, %s1787_s18  ;;  %p1796_p0 = scmp.lt.s32.totalorder %s1787_s18, %s1787_s18 }
  0x7c   : > { %p1790_p7 = pnand %p1788_p5, %p2094_p13  ;;  %p1797_p1 = por %p1796_p0, %p1795_p12 }
  0x7e   : > { %p1791_p9 = pneg %p1790_p7 }
  0x80   : > { %p1798_p2 = pnand %p1797_p1, %p1791_p9 }
  0x82   : > { %1801 = shalt.err (!%p1798_p2)
}
  0x83   : > { %1592 = dma.hbm_to_vmem [thread:$0]  (!%p2078_p11), %s2423_s5, 512, %s284_s10, [#allocation12], %s2432_s19, %s2432_s19, %s1966_s20  }
  0x84   : > { %s40_s8 = sadd.s32 1, %s1956_s28  ;;  %s49_s14 = sadd.s32 1, %s1948_s26 }
  0x85   : > { %p42_p13 = scmp.ge.s32.totalorder %s40_s8, 2  ;;  %p56_p4 = scmp.ne.s32.totalorder %s1948_s26, %s1944_s25 }
  0x86   : > { %p57_p8 = scmp.eq.s32.totalorder %s1960_s29, 0  ;;  %p1608_p6 = scmp.lt.s32.totalorder %s1960_s29, 2 }
  0x87   : > { %s2475_s8 = smov (%p42_p13, %s40_s8), 0  ;;  %p2449_p3 = scmp.eq.s32.totalorder %s2048_s30, 1 }
  0x88   : > { %p58_p10 = por %p57_p8, %p56_p4  ;;  %s44_s21 = ssub.s32 %s1956_s28, %s2475_s8 }
  0x89   : > { %p2197_p5 = por %p2449_p3, %p56_p4  ;;  %s2204_s22 = sand.u32 1, %s1948_s26  }
  0x8a   : > { %p47_p11 = scmp.eq.s32.totalorder %s44_s21, 0  ;;  %s1386_s10 = sshll.u32 %s2204_s22, 4 }
  0x8b   : > { %s2450_s24 = scalar_select %p2197_p5, 1, 0 }
  0x8c   : > { %s1423_s23 = sshll.u32 %s1956_s28, 8  ;;  %s2451_s0 = sld [smem:[#allocation22_spill]] }
  0x8d   : > { %s2209_s12 = scalar_select %p47_p11, %s1948_s26, %s49_s14  }
  0x8e   : > { %s304_s18 = scalar_lea.vmem [#allocation2], %s1386_s10  ;;  %p2218_p7 = pnand %p1608_p6, %p58_p10 }
  0x8f   : > { %s313_s16 = sshll.u32 %s304_s18, 4  ;;  %s301_s21 = scalar_lea.sflag [#allocation3], %s2204_s22  ;;  %s2222_s16 = int_to_ptr.vmem [resolvable:$true] %s313_s16 }
  0x90   : > { %p1804_p12 = pneg %p2218_p7 }
  0x92   : > { %s2214_s13 = scalar_lea.hbm %s2451_s0, %s1423_s23  ;;  %s1807_s17 = scalar_lea.hbm %s2451_s0, 512 }
  0x93   : > { %s1802_s15 = scalar_lea.hbm %s2214_s13, 256  ;;  %p1808_p2 = scmp.lt.u32.totalorder %s2214_s13, %s2451_s0 }
  0x94   : > { %p1803_p9 = scmp.ne.s32.totalorder %s2214_s13, %s1802_s15  ;;  %p1809_p13 = scmp.lt.u32.totalorder %s1807_s17, %s1802_s15 }
  0x95   : > { %p1811_p8 = scmp.lt.u32.totalorder %s1802_s15, %s2214_s13 }
  0x96   : > { %p1805_p0 = pnand %p1804_p12, %p1803_p9  ;;  %p1810_p4 = por %p1809_p13, %p1808_p2 }
  0x98   : > { %p1806_p1 = pneg %p1805_p0  ;;  %p1812_p6 = por %p1811_p8, %p1810_p4 }
  0x9a   : > { %p1813_p10 = pnand %p1812_p6, %p1806_p1 }
  0x9c   : > { %1816 = shalt.err (!%p1813_p10)
}
  0x9d   : > { %s1817_s14 = scalar_lea.vmem %s2222_s16, 256  ;;  %s1968_s10 = smov [#allocation2]  }
  0x9e   : > { %p1818_p3 = scmp.ne.s32.totalorder %s2222_s16, %s1817_s14  ;;  %s1822_s23 = sshll.u32 %s1968_s10, 4  ;;  %s1823_s23 = int_to_ptr.vmem [resolvable:$false] %s1822_s23 }
  0x9f   : > { %s1824_s19 = scalar_lea.vmem %s1823_s23, 512  ;;  %p1825_p0 = scmp.lt.s32.totalorder %s2222_s16, %s1823_s23 }
  0xa0   : > { %p1820_p11 = pnand %p1818_p3, %p1804_p12  ;;  %p1826_p2 = scmp.lt.s32.totalorder %s1824_s19, %s1817_s14 }
  0xa2   : > { %p1821_p9 = pneg %p1820_p11  ;;  %p1827_p13 = por %p1826_p2, %p1825_p0 }
  0xa4   : > { %p1828_p4 = pnand %p1827_p13, %p1821_p9 }
  0xa6   : > { %1831 = shalt.err (!%p1828_p4)
}
  0xa7   : > { %s2453_s15 = smov 128   ;;  %s1389_s17 = sshll.u32 %s2204_s22, 3 }
  0xa8   : > { %1596 = dma.hbm_to_vmem [thread:$0]  (!%p2218_p7), %s2214_s13, 256, %s2222_s16, %s301_s21, %s2453_s15, %s2453_s15, %s1966_s20  }
  0xa9   : > { %s1390_s18 = sshll.u32 %s1956_s28, 7  ;;  %s327_s19 = scalar_lea.vmem [#allocation5], %s1389_s17 }
  0xaa   : > { %s2261_s23 = scalar_lea.hbm %s2419_s1, %s1390_s18  ;;  %s334_s0 = sshll.u32 %s327_s19, 4  ;;  %s335_s0 = int_to_ptr.vmem [resolvable:$true] %s334_s0 }
  0xab   : > { %s2454_s2 = sand.u32 1, %s1960_s29   ;;  %s1832_s4 = scalar_lea.hbm %s2261_s23, 128 }
  0xac   : > { %s324_s3 = scalar_lea.sflag [#allocation6], %s2454_s2  ;;  %p1833_p1 = scmp.ne.s32.totalorder %s2261_s23, %s1832_s4 }
  0xad   : > { %s1837_s13 = scalar_lea.hbm %s2419_s1, 256  ;;  %p1838_p10 = scmp.lt.u32.totalorder %s2261_s23, %s2419_s1 }
  0xae   : > { %p1835_p8 = pnand %p1833_p1, %p1804_p12  ;;  %p1839_p3 = scmp.lt.u32.totalorder %s1837_s13, %s1832_s4 }
  0xaf   : > { %p1841_p9 = scmp.lt.u32.totalorder %s1832_s4, %s2261_s23 }
  0xb0   : > { %p1836_p6 = pneg %p1835_p8  ;;  %p1840_p11 = por %p1839_p3, %p1838_p10 }
  0xb2   : > { %p1842_p0 = por %p1841_p9, %p1840_p11 }
  0xb4   : > { %p1843_p2 = pnand %p1842_p0, %p1836_p6 }
  0xb6   : > { %1846 = shalt.err (!%p1843_p2)
}
  0xb7   : > { %s1847_s2 = scalar_lea.vmem %s335_s0, 128  ;;  %s1969_s15 = smov [#allocation5]  }
  0xb8   : > { %p1848_p13 = scmp.ne.s32.totalorder %s335_s0, %s1847_s2  ;;  %s1852_s17 = sshll.u32 %s1969_s15, 4  ;;  %s1853_s17 = int_to_ptr.vmem [resolvable:$false] %s1852_s17 }
  0xb9   : > { %s1854_s18 = scalar_lea.vmem %s1853_s17, 256  ;;  %p1855_p8 = scmp.lt.s32.totalorder %s335_s0, %s1853_s17 }
  0xba   : > { %p1850_p4 = pnand %p1848_p13, %p1804_p12  ;;  %p1856_p5 = scmp.lt.s32.totalorder %s1854_s18, %s1847_s2 }
  0xbc   : > { %p1851_p1 = pneg %p1850_p4  ;;  %p1857_p3 = por %p1856_p5, %p1855_p8 }
  0xbe   : > { %p1858_p10 = pnand %p1857_p3, %p1851_p1 }
  0xc0   : > { %1861 = shalt.err (!%p1858_p10)
}
  0xc1   : > { %1599 = dma.hbm_to_vmem [thread:$0]  (!%p2218_p7), %s2261_s23, 128, %s335_s0, %s324_s3  }
  0xc2   : > { %p2455_p6 = scmp.ne.s32.totalorder %s2443_s11, 0 }
  0xc3   : > { %s2287_s4 = sand.u32 (!%p2455_p6), 1, %s1944_s25   ;;  %p2456_p5 = scmp.ne.s32.totalorder (!%p2455_p6), %s2440_s9, 0 }
  0xc4   : > { %343 = sbr.rel (%p2455_p6) target bundleno = 1966 (0x7ae), region = 48  ;;  %s1392_s14 = sshll.u32 (!%p2455_p6), %s2287_s4, 4 }
  0xc5   : > { %s346_s10 = scalar_lea.sflag (!%p2455_p6), [#allocation3], %s2287_s4  ;;  %s2293_s19 = scalar_lea.vmem (!%p2455_p6), [#allocation2], %s1392_s14 }
  0xcb   : > { %1915 = dma.done.wait (%p2456_p5), %s346_s10, 256  }
  0xcc   : > { %1917 = vsyncadd (%p2456_p5), %s346_s10, 4294967040  ;;  %s354_s0 = sand.u32 1, %s2048_s30   ;;  %s1393_s3 = sshll.u32 %s2287_s4, 3 }
  0xcd   : > { %s355_s11 = scalar_lea.sflag [#allocation6], %s354_s0  ;;  %s2301_s7 = scalar_lea.vmem [#allocation5], %s1393_s3 }
  0xce   : > { %1919 = dma.done.wait (%p2456_p5), %s355_s11, 128  }
  0xcf   : > { %1921 = vsyncadd (%p2456_p5), %s355_s11, 4294967168  ;;  %p2457_p7 = scmp.eq.s32.totalorder %s2048_s30, 0 }
  0xd1   : > { %1923 = dma.done.wait (%p2457_p7), [#allocation6], 512   ;;  %p2458_p12 = pmov %p2457_p7 }
  0xd2   : > { %p2459_p11 = pmov %p2457_p7 }
  0xd3   : > { %1925 = vsyncadd (%p2458_p12), [#allocation6], 4294966784 }
  0xd4   : > { %1927 = dma.done.wait (%p2459_p11), [#allocation9], 1024   ;;  %p2460_p9 = pmov %p2457_p7 }
  0xd5   : > { %p2461_p0 = pmov %p2457_p7 }
  0xd6   : > { %1929 = vsyncadd (%p2460_p9), [#allocation9], 4294966272 }
  0xd7   : > { %1931 = dma.done.wait (%p2461_p0), [#allocation12], 512   ;;  %p2462_p2 = pmov %p2461_p0 }
  0xd8   : > { %v1970_v0 = vmov 0.0|0.0   ;;  %vm1971_vm0 = vmmov 0   ;;  %v1972_v1 = vmov 0.0   ;;  %v415_v2 = vld [vmem:[#allocation7] sm:$0xff]  ;;  %v416_v3 = vld [vmem:[#allocation7 + $0x8] sm:$0xff]  ;;  %vm419_vm1 = vcmask 261120  }
  0xd9   : > { %1933 = vsyncadd (%p2462_p2), [#allocation12], 4294966784  ;;  %1536 = vmatprep.subr.bf16.mxu1 %v1970_v0  ;;  %1480 = vmatprep.mubr.msk.f32.mxu1 %vm1971_vm0, %v1972_v1  ;;  %v503_v4 = vld [vmem:[#allocation8] sm:$0xff]  ;;  %v1528_v5 = vpack.c.bf16 %v416_v3, %v415_v2  ;;  %v504_v6 = vld [vmem:[#allocation8 + $0x8] sm:$0xff]  ;;  %vm658_vm2 = vcmask 130048   ;;  %s1973_s30 = smov 112  }
  0xda   : > { %v417_v7 = vld [vmem:[#allocation7 + $0x10] sm:$0xff]  ;;  %v418_v8 = vld [vmem:[#allocation7 + $0x18] sm:$0xff]  ;;  %v1537_v9 = vpack.c.bf16 %v504_v6, %v503_v4  ;;  %v580_v17 = vld [vmem:[#allocation10] sm:$0xff]  ;;  %vm743_vm3 = vcmask 64512   ;;  %s409_s9 = scalar_lea.vmem [#allocation13], %s1392_s14  ;;  %s1424_s13 = sshll.u32 %s1952_s27, 8 }
  0xdb   : > { %v1532_v10 = vpack.c.bf16 %v418_v8, %v417_v7  ;;  %v505_v11 = vld [vmem:[#allocation8 + $0x10] sm:$0xff]  ;;  %v506_v12 = vld [vmem:[#allocation8 + $0x18] sm:$0xff]  ;;  %1529 = vmatprep.subr.bf16.mxu0 %v1528_v5  ;;  %v581_v18 = vld [vmem:[#allocation10 + $0x8] sm:$0xff]  ;;  %s1230_s23 = sshll.u32 %s409_s9, 4  ;;  %s2463_s2 = sld [smem:[#allocation26_spill]]  ;;  %s2362_s23 = int_to_ptr.vmem [resolvable:$true] %s1230_s23 }
  0xdc   : > { %v412_v13 = vld [vmem:[%s2293_s19] sm:$0xff]  ;;  %1538 = vmatpush3.bf16.msra.mxu1 %v1537_v9  ;;  %1531 = vmatpush3.bf16.msra.mxu0 %v1528_v5  ;;  %v1540_v14 = vpack.c.bf16 %v506_v12, %v505_v11  ;;  %v413_v16 = vld [vmem:[%s2293_s19 + $0x8] sm:$0xff]  ;;  %v1543_v20 = vpack.c.bf16 %v581_v18, %v580_v17  ;;  %s1215_s17 = scalar_lea.sflag [#allocation4], %s2287_s4  ;;  %s1862_s27 = scalar_lea.vmem %s2362_s23, 256 }
  0xdd   : > { %1469 = vmatprep.mubr.msk.f32.mxu0 %vm419_vm1, %v412_v13  ;;  %1539 = vmatprep.subr.bf16.mxu1 %v1970_v0  ;;  %v414_v15 = vld [vmem:[%s2301_s7] sm:$0xff]  ;;  %v655_v17 = vld [vmem:[#allocation11 + $0x8] sm:$0xff]  ;;  %p1863_p13 = scmp.ne.s32.totalorder %s2362_s23, %s1862_s27  ;;  %p2464_p4 = scmp.ne.s32.totalorder %s2450_s24, 0 }
  0xde   : > { %1533 = vmatprep.subr.bf16.mxu0 %v1532_v10  ;;  %v582_v19 = vld [vmem:[#allocation10 + $0x10] sm:$0xff]  ;;  %v583_v21 = vld [vmem:[#allocation10 + $0x18] sm:$0xff]  ;;  %s1974_s18 = smov [#allocation13]  }
  0xdf   : > { %v1546_v22 = vpack.c.bf16 %v583_v21, %v582_v19  ;;  %v656_v7 = vld [vmem:[#allocation11 + $0x10] sm:$0xff]  ;;  %v657_v8 = vld [vmem:[#allocation11 + $0x18] sm:$0xff]  ;;  %p1864_p1 = pnand %p1863_p13, %p2464_p4  ;;  %s1866_s14 = sshll.u32 %s1974_s18, 4  ;;  %s1867_s14 = int_to_ptr.vmem [resolvable:$false] %s1866_s14 }
  0xe0   : > { %1541 = vmatpush3.bf16.msra.mxu1 %v1540_v14  ;;  %1535 = vmatpush3.bf16.msra.mxu0 %v1532_v10  ;;  %v1548_v9 = vpack.c.bf16 %v657_v8, %v656_v7  ;;  %v1417_v21 = vld [vmem:[%s2424_s6] ss:$0 sm:$0xff]  ;;  %s1868_s10 = scalar_lea.vmem %s1867_s14, 512  ;;  %p1869_p3 = scmp.lt.s32.totalorder %s2362_s23, %s1867_s14 }
  0xe1   : > { %1542 = vmatprep.subr.bf16.mxu0 %v1970_v0  ;;  %s2367_s15 = scalar_lea.hbm %s2463_s2, %s1424_s13  ;;  %p1865_p8 = pneg %p1864_p1 }
  0xe2   : > { %p1870_p10 = scmp.lt.s32.totalorder %s1868_s10, %s1862_s27 }
  0xe3   : > { %1481 = vmatmul.mubr.msk.f32.vlgmr.msra.gmra.mrb[0].mxu1 %vm419_vm1, %v414_v15  ;;  %1470 = vmatmul.mubr.msk.f32.vlgmr.msra.gmra.mrb[0].mxu0 %vm419_vm1, %v413_v16  ;;  %v654_v16 = vld [vmem:[#allocation11] sm:$0xff] }
  0xe4   : > { %1491 = vmatprep.mubr.msk.f32.mxu0 %vm1971_vm0, %v1972_v1  ;;  %1544 = vmatpush3.bf16.msra.mxu0 %v1543_v20  ;;  %v1552_v18 = vpack.c.bf16 %v655_v17, %v654_v16  ;;  %p1871_p6 = por %p1870_p10, %p1869_p3 }
  0xe5   : > { %1545 = vmatprep.subr.bf16.mxu0 %v1970_v0 }
  0xe6   : > { %p1872_p5 = pnand %p1871_p6, %p1865_p8 }
  0xe8   : > { %1547 = vmatpush3.bf16.msra.mxu0 %v1546_v22 }
  0xe9   : > { %1549 = vmatprep.subr.bf16.mxu0 %v1548_v9 }
  0xeb   : > { %1492 = vmatmul.mubr.msk.f32.vlgmr.msra.gmra.mrb[2].mxu0 %vm419_vm1, %v414_v15 }
  0xec   : > { %1551 = vmatpush3.bf16.msra.mxu0 %v1548_v9 }
  0xed   : > { %1553 = vmatprep.subr.bf16.mxu0 %v1552_v18 }
 0x1b6   : > { %v576_v23 = vpop.f32.mrb[0].mxu1  ;;  %v1471_v24 = vpop.f32.mrb[0].mxu0 }
 0x1b7   : > { %v1482_v25 = vpop.f32.mrb[1].mxu1  ;;  %1494 = vmatprep.subr.msk.mxu1 %vm658_vm2, %v576_v23  ;;  %v492_v26 = vpop.f32.mrb[1].mxu0  ;;  %v502_v28 = vmul.f32 0.25, %v1471_v24 }
 0x1b8   : > { %v501_v27 = vmul.f32 0.25, %v492_v26  ;;  %1495 = vmatpush3.xpose.msk.msra.mxu1 %vm658_vm2, %v576_v23 }
 0x1ba   : > { %847 = vrot.lane.b32.xlu1 %v501_v27, %s1973_s30  ;;  %1496 = vmatprep.mubr.msk.f32.mxu1 %vm658_vm2, %v501_v27 }
 0x1bb   : > { %1497 = vmatmul.mubr.msk.f32.vlgmr.msra.gmra.mrb[2].mxu1 %vm658_vm2, %v502_v28 }
 0x1be   : > { %v650_v33 = vpop.f32.mrb[2].mxu0 }
 0x1bf   : > { %1499 = vmatprep.subr.mxu1 %v650_v33  ;;  %v1493_v34 = vpop.f32.mrb[3].mxu0 }
 0x1c0   : > { %1500 = vmatpush3.msra.mxu1 %v650_v33 }
 0x22c   : > { %v848_v46 = vpop.permute.xlu1 %847 }
 0x28e   : > { %v1498_v29 = vpop.f32.mrb[2].mxu1 }
 0x28f   : > { %v734_v30 = vpop.f32.mrb[3].mxu1  ;;  %v747_v32 = vsel %vm743_vm3, %v1498_v29, -inf }
 0x290   : > { %v744_v31 = vsel %vm743_vm3, %v734_v30, -inf }
 0x291   : > { %745 = vmax.xlane.f32.xlu0 %v744_v31 }
 0x295   : > { %748 = vmax.xlane.f32.xlu0 %v747_v32 }
 0x2ab   : > { %851 = vrot.lane.b32.xlu0 %v576_v23, %s1973_s30 }
 0x31e   : > { %v746_v35 = vpop.xlane.xlu0 %745 }
 0x31f   : > { %v750_v36 = vsub.f32 %v734_v30, %v746_v35 }
 0x321   : > { %v752_v39 = vmul.f32 1.442695, %v750_v36 }
 0x322   : > { %v749_v37 = vpop.xlane.xlu0 %748 }
 0x323   : > { %v751_v38 = vsub.f32 %v1498_v29, %v749_v37 }
 0x325   : > { %v754_v40 = vmul.f32 1.442695, %v751_v38 }
 0x326   : > { %v852_v41 = vpop.permute.xlu0 %851 }
 0x327   : > { %1674 = vpow2.f32 %v754_v40  ;;  %1504 = vmatprep.subr.msk.mxu1 %vm658_vm2, %v852_v41 }
 0x328   : > { %1676 = vpow2.f32 %v752_v39 }
 0x331   : > { %v1675_v42 = vpop.eup %1674 }
 0x332   : > { %v759_v43 = vsel %vm743_vm3, %v1675_v42, 0.0  ;;  %v1677_v44 = vpop.eup %1676 }
 0x333   : > { %760 = vadd.xlane.f32.xlu1 %v759_v43  ;;  %v756_v45 = vsel %vm743_vm3, %v1677_v44, 0.0 }
 0x337   : > { %757 = vadd.xlane.f32.xlu1 %v756_v45 }
 0x348   : > { %849 = vrot.lane.b32.xlu1 %v502_v28, %s1973_s30 }
 0x3c0   : > { %v761_v47 = vpop.xlane.xlu1 %760 }
 0x3c1   : > { %1678 = vrcp.f32 %v761_v47 }
 0x3c4   : > { %v758_v48 = vpop.xlane.xlu1 %757 }
 0x3c5   : > { %1680 = vrcp.f32 %v758_v48 }
 0x3c8   : > { %v850_v53 = vpop.permute.xlu1 %849 }
 0x3cb   : > { %v1679_v49 = vpop.eup %1678 }
 0x3cc   : > { %v765_v52 = vmul.f32 %v1679_v49, %v1675_v42 }
 0x3cf   : > { %v1681_v50 = vpop.eup %1680 }
 0x3d0   : > { %v764_v51 = vmul.f32 %v1681_v50, %v1677_v44 }
 0x3d2   : > { %1501 = vmatprep.mubr.msk.f32.mxu1 %vm743_vm3, %v764_v51 }
 0x3d3   : > { %1502 = vmatmul.mubr.msk.f32.vlgmr.msra.gmra.mrb[4].mxu1 %vm743_vm3, %v765_v52 }
 0x3d4   : > { %1505 = vmatpush3.xpose.msk.msra.mxu1 %vm658_vm2, %v852_v41  ;;  %1506 = vmatprep.mubr.msk.f32.mxu1 %vm658_vm2, %v848_v46 }
 0x3d7   : > { %1507 = vmatmul.mubr.msk.f32.vlgmr.msra.gmra.mrb[6].mxu1 %vm658_vm2, %v850_v53 }
 0x4a6   : > { %v1503_v54 = vpop.f32.mrb[4].mxu1 }
 0x4a7   : > { %v838_v55 = vpop.f32.mrb[5].mxu1 }
 0x4aa   : > { %v1508_v56 = vpop.f32.mrb[6].mxu1 }
 0x4ab   : > { %v925_v57 = vpop.f32.mrb[7].mxu1  ;;  %v937_v58 = vsel %vm743_vm3, %v1508_v56, -inf }
 0x4ac   : > { %938 = vmax.xlane.f32.xlu0 %v937_v58  ;;  %v934_v59 = vsel %vm743_vm3, %v925_v57, -inf }
 0x4ad   : > { %935 = vmax.xlane.f32.xlu1 %v934_v59 }
 0x4be   : > { %957 = vrot.lane.b32.xlu1 %v650_v33, %s1973_s30 }
 0x539   : > { %v939_v60 = vpop.xlane.xlu0 %938 }
 0x53a   : > { %v941_v61 = vsub.f32 %v1508_v56, %v939_v60  ;;  %v936_v62 = vpop.xlane.xlu1 %935 }
 0x53b   : > { %v940_v63 = vsub.f32 %v925_v57, %v936_v62 }
 0x53c   : > { %v944_v0 = vmul.f32 1.442695, %v941_v61 }
 0x53d   : > { %v942_v1 = vmul.f32 1.442695, %v940_v63 }
 0x53e   : > { %v958_v2 = vpop.permute.xlu1 %957 }
 0x53f   : > { %1682 = vpow2.f32 %v942_v1  ;;  %1509 = vmatprep.subr.mxu1 %v958_v2 }
 0x540   : > { %1510 = vmatpush3.msra.mxu1 %v958_v2  ;;  %1684 = vpow2.f32 %v944_v0 }
 0x549   : > { %v1683_v3 = vpop.eup %1682 }
 0x54a   : > { %v946_v4 = vsel %vm743_vm3, %v1683_v3, 0.0  ;;  %v1685_v5 = vpop.eup %1684 }
 0x54b   : > { %947 = vadd.xlane.f32.xlu0 %v946_v4  ;;  %v949_v6 = vsel %vm743_vm3, %v1685_v5, 0.0 }
 0x54f   : > { %950 = vadd.xlane.f32.xlu0 %v949_v6 }
 0x5d8   : > { %v948_v10 = vpop.xlane.xlu0 %947 }
 0x5d9   : > { %1686 = vrcp.f32 %v948_v10 }
 0x5dc   : > { %v951_v11 = vpop.xlane.xlu0 %950 }
 0x5dd   : > { %1688 = vrcp.f32 %v951_v11 }
 0x5e3   : > { %v1687_v12 = vpop.eup %1686 }
 0x5e4   : > { %v954_v13 = vmul.f32 %v1687_v12, %v1683_v3 }
 0x5e6   : > { %1511 = vmatprep.mubr.msk.f32.mxu1 %vm743_vm3, %v954_v13 }
 0x5e7   : > { %v1689_v14 = vpop.eup %1688 }
 0x5e8   : > { %v955_v15 = vmul.f32 %v1689_v14, %v1685_v5 }
 0x5ea   : > { %1512 = vmatmul.mubr.msk.f32.vlgmr.msra.gmra.mrb[8].mxu1 %vm743_vm3, %v955_v15 }
 0x6bd   : > { %v1513_v19 = vpop.f32.mrb[8].mxu1 }
 0x6be   : > { %v1032_v20 = vpop.f32.mrb[9].mxu1 }
 0x6bf   : > { %1518 = vmatprep.mubr.msk.f32.mxu0 %vm658_vm2, %v1032_v20 }
 0x6c0   : > { %1519 = vmatmul.mubr.msk.f32.vlgmr.msra.gmra.mrb[4].mxu0 %vm658_vm2, %v1513_v19 }
 0x6c1   : > { %1555 = vmatpush3.bf16.msra.mxu0 %v1552_v18  ;;  %1525 = vmatprep.mubr.msk.f32.mxu0 %vm658_vm2, %v838_v55 }
 0x6c8   : > { %1526 = vmatmul.mubr.msk.f32.vlgmr.msra.gmra.mrb[4].mxu0 %vm658_vm2, %v1503_v54 }
 0x79b   : > { %v1527_v22 = vpop.f32.mrb[4].mxu0 }
 0x79c   : > { %v1211_v23 = vadd.f32 %v1527_v22, %v1417_v21  ;;  %v1194_v24 = vpop.f32.mrb[5].mxu0 }
 0x79d   : > { %v1210_v25 = vadd.f32 %v1417_v21, %v1194_v24 }
 0x79e   : > { %1213 = vst.msk [vmem:[%s409_s9 + $0x8] sm:$0xff] %vm419_vm1, %v1211_v23 }
 0x79f   : > { %1212 = vst.msk [vmem:[%s409_s9] sm:$0xff] %vm419_vm1, %v1210_v25 }
 0x7a0   : > { %1875 = shalt.err (!%p1872_p5)
}
 0x7a1   : > { %s1876_s19 = scalar_lea.hbm %s2367_s15, 256  ;;  %s1880_s11 = scalar_lea.hbm %s2463_s2, 512 }
 0x7a2   : > { %p1877_p7 = scmp.ne.s32.totalorder %s2367_s15, %s1876_s19  ;;  %p1881_p9 = scmp.lt.u32.totalorder %s2367_s15, %s2463_s2 }
 0x7a3   : > { %p1882_p0 = scmp.lt.u32.totalorder %s1880_s11, %s1876_s19  ;;  %p1884_p13 = scmp.lt.u32.totalorder %s1876_s19, %s2367_s15 }
 0x7a4   : > { %p1878_p12 = pnand %p1877_p7, %p2464_p4 }
 0x7a5   : > { %p1883_p2 = por %p1882_p0, %p1881_p9 }
 0x7a6   : > { %p1879_p11 = pneg %p1878_p12 }
 0x7a7   : > { %p1885_p1 = por %p1884_p13, %p1883_p2 }
 0x7a9   : > { %p1886_p8 = pnand %p1885_p1, %p1879_p11 }
 0x7ab   : > { %1889 = shalt.err (!%p1886_p8)
}
 0x7ac   : > { %s1975_s9 = smov 128   ;;  %s1976_s20 = smov 8  }
 0x7ad   : > { %1578 = dma.vmem_to_hbm [thread:$0]  (%p2464_p4), %s2362_s23, 256, %s2367_s15, %s1215_s17, %s1975_s9, %s1975_s9, %s1976_s20  }
 0x7ae PF: > { %s2465_s22 = sld [smem:[#allocation20_spill]]  ;;  %s2466_s13 = sld [smem:[#allocation21_spill]] }
 0x7af   : > { %p2468_p10 = scmp.ge.s32.totalorder %s1960_s29, 2 }
 0x7b4   : > { %s1245_s16 = sand.u32 1, %s2465_s22   ;;  %p2467_p3 = scmp.ne.s32.totalorder %s2466_s13, 0 }
 0x7b5   : > { %s1246_s21 = scalar_lea.sflag [#allocation4], %s1245_s16 }
 0x7b6   : > { %p1601_p6 = pnand %p2468_p10, %p2467_p3 }
 0x7b8   : > { %1935 = dma.done.wait (!%p1601_p6), %s1246_s21, 256  }
 0x7b9   : > { %1937 = vsyncadd (!%p1601_p6), %s1246_s21, 4294967040  ;;  %s28_s29 = sadd.s32 1, %s1960_s29   ;;  %s2469_s24 = smov %s1944_s25 }
 0x7ba   : > { %p25_p5 = scmp.ge.s32.totalorder %s28_s29, 4   ;;  %s2470_s25 = smov %s1948_s26 }
 0x7bb   : > { %s2471_s26 = smov %s2209_s12  ;;  %s2472_s27 = smov %s1956_s28 }
 0x7bc   : > { %s2473_s28 = smov %s2475_s8  ;;  %27 = sbr.rel (!%p25_p5) target bundleno = 16 (0x10), region = 122 }
 0x7c3   :  { %1251 = vsyncpa [#allocation3], 1 }
 0x7c4   :  { %1253 = vsyncpa [#allocation3 + $0x1], 1 }
 0x7c5   :  { %1254 = vsyncpa [#allocation6], 1 }
 0x7c6   :  { %1256 = vsyncpa [#allocation6 + $0x1], 1 }
 0x7c7   :  { %1257 = vsyncpa [#allocation9], 1 }
 0x7c8   :  { %1258 = vsyncpa [#allocation12], 1 }
 0x7c9   :  { %1259 = vsyncpa [#allocation4], 1 }
 0x7ca   :  { %1261 = vsyncpa [#allocation4 + $0x1], 1 }

</bundles_post_ra>
